<compile_context>
chip_gen: v7x
topology: tpu7x:2x2x1
jax: 0.10.0
libtpu: 0.0.40
codegen_flags: <defaults>
</compile_context>

<pallas_src>
import jax
import jax.numpy as jnp
from jax.experimental import pallas as pl
from jax.experimental.pallas import tpu as pltpu

_NUM_CORES = 2  # conservative (v7x has 2 TCs/chip); harmless over-split on v5e/v6e


def ar_kernel(x_ref, w_ref, b_ref, o_ref):
    # x_ref: (TB, lag*F)  original dtype -- lag-window rows only
    # w_ref: (lag*F, D)   f32            -- block-sparse stacked AR weights
    # b_ref: (1, D)       f32            -- stacked biases
    # o_ref: (TB, D)      f32
    x = x_ref[...]
    if x.dtype != jnp.float32:
        x = x.astype(jnp.float32)  # lossless bf16->f32, matches torch .float()
    o_ref[...] = (
        jnp.dot(x, w_ref[...], preferred_element_type=jnp.float32) + b_ref[...]
    )


def _vmem_capacity_bytes():
    try:
        return int(pltpu.get_tpu_info().vmem_capacity_bytes)
    except Exception:
        return 64 << 20  # safe lower bound (v7x per-TC VMEM)


def _footprint_bytes(tb, K, D, in_itemsize):
    """Conservative in-kernel VMEM footprint for a batch tile of tb rows."""
    fixed = 2 * (K * D + D) * 4                       # weights + bias (dbl-buffered)
    per_row = 2 * K * in_itemsize + K * 4 + 2 * D * 4  # x dbl-buf + f32 temp + out dbl-buf
    return fixed + per_row * tb


def _pick_batch_tile(batch, K, D, in_itemsize, vmem_cap):
    """Largest batch tile that (a) fits ~75% of VMEM, (b) leaves >=2 grid
    steps per TensorCore so megacore + double-buffering have work to overlap."""
    if batch <= 8:
        return batch
    budget = (vmem_cap * 3) // 4
    fixed = 2 * (K * D + D) * 4
    per_row = 2 * K * in_itemsize + K * 4 + 2 * D * 4
    tb_vmem = max(8, (budget - fixed) // max(per_row, 1))
    tb_pipe = max(8, pl.cdiv(batch, 2 * _NUM_CORES))
    tb = max(8, (min(tb_vmem, tb_pipe) // 8) * 8)
    return int(min(tb, batch))


def ar_model_forward(x, weights, biases, *, input_dim, lag):
    """x: (batch, time_steps, features), any float dtype.

    weights: (input_dim, lag)  -- layers[i].weight[0, :]
    biases:  (input_dim,)      -- layers[i].bias[0]
    returns: (batch, input_dim) float32
    """
    B, T, F = x.shape
    D = input_dim
    if T < lag:
        raise ValueError(f"time_steps ({T}) must be >= lag ({lag})")
    if D > min(F, 5):
        raise ValueError(
            f"input_dim ({D}) must be <= min(features, 5) = {min(F, 5)} "
            "(forward truncates features to 5 before per-channel indexing)")

    K = lag * F

    # Block-sparse weight (lag*F, D): row t*F + i, col i holds weights[i, t].
    # Only lag*F rows — no zeros for the out-of-window time steps.
    w_blk = (weights.T.astype(jnp.float32)[:, :, None]
             * jnp.eye(D, dtype=jnp.float32)[None, :, :])            # (lag, D, D)
    w_big = (jnp.zeros((lag, F, D), dtype=jnp.float32)
             .at[:, :D, :].set(w_blk)
             .reshape(K, D))                                          # (lag*F, D)
    b2 = biases.reshape(1, D).astype(jnp.float32)

    # Only the lag window is read by the kernel (T/lag less HBM traffic).
    # The reshape after the contiguous slice is free (row-major layout).
    x_win = x[:, T - lag:, :].reshape(B, K)
    itemsize = x_win.dtype.itemsize

    vmem_cap = _vmem_capacity_bytes()
    TB = _pick_batch_tile(B, K, D, itemsize, vmem_cap)
    footprint = _footprint_bytes(TB, K, D, itemsize)
    vmem_limit = int(min(vmem_cap, max(16 << 20, footprint + (4 << 20))))

    cost = pl.CostEstimate(
        flops=2 * B * K * D,
        transcendentals=0,
        bytes_accessed=int(B * K * itemsize + K * D * 4 + D * 4 + B * D * 4),
    )

    out = pl.pallas_call(
        ar_kernel,
        out_shape=jax.ShapeDtypeStruct((B, D), jnp.float32),
        grid_spec=pltpu.PrefetchScalarGridSpec(
            num_scalar_prefetch=0,
            grid=(pl.cdiv(B, TB),),
            in_specs=[
                pl.BlockSpec((TB, K), lambda i: (i, 0)),   # lag-window x tile, pipelined
                pl.BlockSpec((K, D), lambda i: (0, 0)),    # weights, VMEM-resident
                pl.BlockSpec((1, D), lambda i: (0, 0)),    # bias, VMEM-resident
            ],
            out_specs=pl.BlockSpec((TB, D), lambda i: (i, 0)),
        ),
        compiler_params=pltpu.CompilerParams(
            dimension_semantics=("parallel",),             # megacore split on v7x
            vmem_limit_bytes=vmem_limit,
        ),
        cost_estimate=cost,
    )(x_win, w_big, b2)
    return out


if __name__ == "__main__":
    # Small shapes consistent with the module: input_dim must be <= 5
    # (forward truncates features to 5 before per-channel indexing).
    batch = 2
    time_steps = 16
    features = 6
    input_dim = 4
    lag = 8

    key = jax.random.PRNGKey(0)
    kx, kw, kb = jax.random.split(key, 3)

    x = jax.random.normal(kx, (batch, time_steps, features), dtype=jnp.float32)

    # Deterministic param init mimicking nn.Linear(lag, 1):
    # uniform(-1/sqrt(lag), 1/sqrt(lag)) for weight and bias.
    bound = 1.0 / (lag ** 0.5)
    weights = jax.random.uniform(
        kw, (input_dim, lag), minval=-bound, maxval=bound, dtype=jnp.float32)
    biases = jax.random.uniform(
        kb, (input_dim,), minval=-bound, maxval=bound, dtype=jnp.float32)

    out = ar_model_forward(x, weights, biases, input_dim=input_dim, lag=lag)
    out = jax.block_until_ready(out)

    # Pure-JAX reference (same math, outside the kernel).
    x32 = x.astype(jnp.float32)[:, :, 0:5]
    x_lag = x32[:, -lag:, 0:input_dim]                       # (B, LAG, D)
    ref = jnp.einsum("btd,dt->bd", x_lag, weights) + biases  # (B, D)
    assert out.shape == (batch, input_dim)
    assert jnp.allclose(out, ref, atol=1e-5, rtol=1e-5)

    print("KERNEL_OK")
</pallas_src>

<mosaic_0001>
module attributes {stable_mosaic.version = 11 : i64} {
  func.func @ar_kernel(%arg0: i32, %arg1: memref<2x48xf32, #tpu.memory_space<vmem>>, %arg2: memref<48x4xf32, #tpu.memory_space<vmem>>, %arg3: memref<1x4xf32, #tpu.memory_space<vmem>>, %arg4: memref<2x4xf32, #tpu.memory_space<vmem>>) attributes {dimension_semantics = [#tpu.dimension_semantics<parallel>], iteration_bounds = array<i64: 1>, scalar_prefetch = 0 : i64, scratch_operands = 0 : i64, tpu.core_type = #tpu.core_type<tc>, window_params = [{transform_indices = @transform_0, window_bounds = array<i64: 2, 48>}, {pipeline_mode = #tpu.pipeline_mode<synchronous>, transform_indices = @transform_1, window_bounds = array<i64: 48, 4>}, {pipeline_mode = #tpu.pipeline_mode<synchronous>, transform_indices = @transform_2, window_bounds = array<i64: 1, 4>}, {transform_indices = @transform_3, window_bounds = array<i64: 2, 4>}]} {
    %c0 = arith.constant 0 : index
    %c0_0 = arith.constant 0 : index
    %0 = vector.load %arg1[%c0, %c0_0] : memref<2x48xf32, #tpu.memory_space<vmem>>, vector<2x48xf32>
    %c0_1 = arith.constant 0 : index
    %c0_2 = arith.constant 0 : index
    %1 = vector.load %arg2[%c0_1, %c0_2] : memref<48x4xf32, #tpu.memory_space<vmem>>, vector<48x4xf32>
    %cst = arith.constant dense<0.000000e+00> : vector<2x4xf32>
    %2 = tpu.matmul %0, %1, %cst {dimension_numbers = #tpu.dot_dimension_numbers<[1], [0], [0], [1], [0, 0, 1, 1], [], []>} : vector<2x48xf32>, vector<48x4xf32>, vector<2x4xf32> -> vector<2x4xf32>
    %c0_3 = arith.constant 0 : index
    %c0_4 = arith.constant 0 : index
    %3 = vector.load %arg3[%c0_3, %c0_4] : memref<1x4xf32, #tpu.memory_space<vmem>>, vector<1x4xf32>
    %4 = vector.broadcast %3 : vector<1x4xf32> to vector<2x4xf32>
    %5 = arith.addf %2, %4 : vector<2x4xf32>
    %c0_5 = arith.constant 0 : index
    %c0_6 = arith.constant 0 : index
    %6 = vector.load %arg4[%c0_5, %c0_6] : memref<2x4xf32, #tpu.memory_space<vmem>>, vector<2x4xf32>
    tpu.vector_store %arg4[%c0_5, %c0_6], %5 {strides = array<i32>} : memref<2x4xf32, #tpu.memory_space<vmem>>, vector<2x4xf32>,
    return
  }
  func.func @transform_0(%arg0: i32) -> (i32, i32) {
    %c0_i32 = arith.constant 0 : i32
    %c0_i32_0 = arith.constant 0 : i32
    return %arg0, %c0_i32 : i32, i32
  }
  func.func @transform_1(%arg0: i32) -> (i32, i32) {
    %c0_i32 = arith.constant 0 : i32
    %c0_i32_0 = arith.constant 0 : i32
    %c0_i32_1 = arith.constant 0 : i32
    return %c0_i32, %c0_i32_0 : i32, i32
  }
  func.func @transform_2(%arg0: i32) -> (i32, i32) {
    %c0_i32 = arith.constant 0 : i32
    %c0_i32_0 = arith.constant 0 : i32
    %c0_i32_1 = arith.constant 0 : i32
    return %c0_i32, %c0_i32_0 : i32, i32
  }
  func.func @transform_3(%arg0: i32) -> (i32, i32) {
    %c0_i32 = arith.constant 0 : i32
    %c0_i32_0 = arith.constant 0 : i32
    return %arg0, %c0_i32 : i32, i32
  }
}

</mosaic_0001>

<bundles_post_ra>
// kernel: tpu_custom_call.1
= control target key start
LH: loop header
LB: loop body
LE: loop exit
PB: predicated region body
PF: predicated region fallthrough
CT: control target
= control target key end

     0   :  { %v180_v3 = vmov 0.0|0.0   ;;  %vm181_vm0 = vmmov 0   ;;  %v182_v6 = vmov 0.0   ;;  %s240_s0 = inlined_call_operand.vmem [shape: f32[2,48], index: 0, kind: input, shape index: {}]   ;;  %s241_s1 = inlined_call_operand.vmem [shape: f32[48,4], index: 1, kind: input, shape index: {}]   ;;  %s242_s2 = inlined_call_operand.vmem [shape: f32[1,4], index: 2, kind: input, shape index: {}]   ;;  %s243_s3 = inlined_call_operand.hbm [shape: f32[2,4], index: 3, kind: output, shape index: {}]  }
   0x1   :  { %v16_v0 = vld [vmem:[%s241_s1] sm:$0xff]  ;;  %v17_v1 = vld [vmem:[%s241_s1 + $0x8] sm:$0xff]  ;;  %v18_v2 = vld [vmem:[%s241_s1 + $0x10] sm:$0xff]  ;;  %143 = vmatprep.subr.bf16.mxu0 %v180_v3  ;;  %140 = vmatprep.mubr.msk.f32.mxu0 %vm181_vm0, %v182_v6 }
   0x2   :  { %v144_v4 = vpack.c.bf16 %v17_v1, %v16_v0  ;;  %v19_v5 = vld [vmem:[%s241_s1 + $0x18] sm:$0xff] }
   0x3   :  { %8 = vsyncpa [#allocation3], 0  ;;  %v147_v7 = vpack.c.bf16 %v19_v5, %v18_v2  ;;  %v20_v8 = vld [vmem:[%s241_s1 + $0x20] sm:$0xff]  ;;  %v21_v9 = vld [vmem:[%s241_s1 + $0x28] sm:$0xff]  ;;  %vm29_vm1 = vcmask 392192   ;;  %s183_s28 = smov [#allocation2]  }
   0x4   :  { %145 = vmatpush3.bf16.msra.mxu0 %v144_v4  ;;  %v150_v10 = vpack.c.bf16 %v21_v9, %v20_v8  ;;  %v15_v11 = vld [vmem:[%s240_s0] sm:$0x3]  ;;  %s111_s29 = sshll.u32 %s183_s28, 4  ;;  %vm103_vm2 = vcmask 25600   ;;  %s112_s29 = int_to_ptr.vmem [resolvable:$true] %s111_s29 }
   0x5   :  { %146 = vmatprep.subr.bf16.mxu0 %v180_v3  ;;  %v119_v12 = vld [vmem:[%s242_s2] ss:$0 sm:$0xff]  ;;  %s156_s1 = scalar_lea.vmem %s112_s29, 32  ;;  %p161_p1 = scmp.lt.s32.totalorder %s112_s29, %s112_s29 }
   0x6   :  { %p157_p0 = scmp.ne.s32.totalorder %s112_s29, %s156_s1  ;;  %p162_p2 = scmp.lt.s32.totalorder %s156_s1, %s156_s1 }
   0x8   :  { %148 = vmatpush3.bf16.msra.mxu0 %v147_v7  ;;  %p163_p3 = por %p162_p2, %p161_p1 }
   0x9   :  { %149 = vmatprep.subr.bf16.mxu0 %v180_v3 }
   0xa   :  { %p164_p4 = pnand %p163_p3, %p157_p0 }
   0xc   :  { %151 = vmatpush3.bf16.msra.mxu0 %v150_v10 }
   0xf   :  { %141 = vmatmul.mubr.msk.f32.vlgmr.msra.gmra.mrb[0].mxu0 %vm29_vm1, %v15_v11 }
  0xe2   :  { %v99_v13 = vpop.f32.mrb[0].mxu0 }
  0xe3   :  { %v100_v14 = vadd.f32 %v119_v12, %v99_v13  ;;  %v142_v15 = vpop.f32.mrb[1].mxu0 }
  0xe5   :  { %104 = vst.msk [vmem:[#allocation2] sm:$0x3] %vm103_vm2, %v100_v14 }
  0xe6   :  { %167 = shalt.err (!%p164_p4)
}
  0xe7   :  { %s168_s4 = scalar_lea.hbm %s243_s3, 32 }
  0xe8   :  { %p169_p5 = scmp.ne.s32.totalorder %s243_s3, %s168_s4  ;;  %p172_p6 = scmp.lt.u32.totalorder %s168_s4, %s243_s3 }
  0xea   :  { %p174_p7 = pnand %p172_p6, %p169_p5 }
  0xec   :  { %177 = shalt.err (!%p174_p7)
}
  0xed   :  { %114 = dma.vmem_to_hbm [thread:$0]  %s112_s29, 32, %s243_s3, [#allocation3]  }
  0xee   :  { %178 = dma.done.wait [#allocation3], 32  }
  0xef   :  { %179 = vsyncadd [#allocation3], 4294967264 }
  0xf0   :  { %118 = vsyncpa [#allocation3], 1 }

</bundles_post_ra>
